<compile_context>
chip_gen: v5e
topology: v5e:2x2
jax: 0.10.0
libtpu: 0.0.40
codegen_flags: <defaults>
</compile_context>

<pallas_src>
import functools

import jax
import jax.numpy as jnp
from jax.experimental import pallas as pl
from jax.experimental.pallas import tpu as pltpu


def cvae_kernel(
    x_ref, mom_ref, eps_ref,
    we_ref, be_ref,                 # encoder layer 1 (fused [pos,mom] weight)
    wh_ref, bh_ref,                 # fused mu/logvar head: (H, 2*Dz)
    wdz_ref, wdm_ref, bd1_ref,      # decoder layer 1 (split over [z, mom])
    wd2_ref, bd2_ref,               # decoder output layer
    out_ref,                        # packed (TB, Dp + 2*Dz): [recon | mu | logvar]
):
    x = x_ref[...]        # (TB, Dp+Dm)  -- host-side concatenated [pos, mom]
    mom = mom_ref[...]    # (TB, Dm)
    eps = eps_ref[...]    # (TB, Dz)
    dz = eps.shape[1]

    # ---- encoder: h = relu(x @ We + be) -------------------------------------
    h = jnp.dot(x, we_ref[...], preferred_element_type=jnp.float32) + be_ref[...]
    h = jnp.maximum(h, 0.0)

    # ---- fused heads: [mu | logvar] = h @ Wh + bh ---------------------------
    heads = jnp.dot(h, wh_ref[...], preferred_element_type=jnp.float32) + bh_ref[...]
    mu = heads[:, :dz]
    logvar = heads[:, dz:]

    # ---- reparameterize: z = mu + eps * exp(0.5 * logvar) -------------------
    z = mu + eps * jnp.exp(0.5 * logvar)

    # ---- decoder: hd = relu([z, mom] @ Wd1 + bd1); recon = hd @ Wd2 + bd2 ---
    hd = (jnp.dot(z, wdz_ref[...], preferred_element_type=jnp.float32)
          + jnp.dot(mom, wdm_ref[...], preferred_element_type=jnp.float32)
          + bd1_ref[...])
    hd = jnp.maximum(hd, 0.0)
    recon = jnp.dot(hd, wd2_ref[...], preferred_element_type=jnp.float32) + bd2_ref[...]

    # ---- single lane-contiguous store: [recon | mu | logvar] ----------------
    out_ref[...] = jnp.concatenate([recon, heads], axis=-1)


@functools.partial(jax.jit, static_argnames=("block_b",))
def cvae_forward(position, momenta, eps, params, *, block_b=512):
    B, Dp = position.shape
    Dm = momenta.shape[1]
    Dz = eps.shape[1]
    H = params["we"].shape[1]

    # host-side concat (one-time layout op) -> single encoder matmul in-kernel
    x = jnp.concatenate([position, momenta], axis=-1)          # (B, Dp+Dm)

    # batch tile: multiple of 8 sublanes, capped by block_b
    TB = min(block_b, max(8, B))
    TB = ((TB + 7) // 8) * 8
    Bp = ((B + TB - 1) // TB) * TB
    if Bp != B:
        pad = Bp - B
        x = jnp.pad(x, ((0, pad), (0, 0)))
        momenta = jnp.pad(momenta, ((0, pad), (0, 0)))
        eps = jnp.pad(eps, ((0, pad), (0, 0)))

    n_out = Dp + 2 * Dz
    grid = (Bp // TB,)

    # activations tile over batch; weights/biases use constant index_maps so
    # they stay resident in VMEM across grid steps (no per-step re-DMA).
    def batched(nfeat):
        return pl.BlockSpec((TB, nfeat), lambda i: (i, 0))

    def resident(shape):
        return pl.BlockSpec(shape, lambda i: (0, 0))

    in_specs = [
        batched(Dp + Dm),                       # x
        batched(Dm),                            # momenta
        batched(Dz),                            # eps
        resident((Dp + Dm, H)),                 # we
        resident((1, H)),                       # be
        resident((H, 2 * Dz)),                  # wh  (fused mu/logvar head)
        resident((1, 2 * Dz)),                  # bh
        resident((Dz, H)),                      # wd_z
        resident((Dm, H)),                      # wd_m
        resident((1, H)),                       # bd1
        resident((H, Dp)),                      # wd2
        resident((1, Dp)),                      # bd2
    ]
    out_spec = pl.BlockSpec((TB, n_out), lambda i: (i, 0))

    packed = pl.pallas_call(
        cvae_kernel,
        out_shape=jax.ShapeDtypeStruct((Bp, n_out), jnp.float32),
        grid=grid,
        in_specs=in_specs,
        out_specs=out_spec,
        compiler_params=pltpu.CompilerParams(
            dimension_semantics=("parallel",),      # megacore on v7x
            vmem_limit_bytes=64 << 20,
        ),
    )(x, momenta, eps,
      params["we"], params["be"],
      params["wh"], params["bh"],
      params["wd_z"], params["wd_m"], params["bd1"],
      params["wd2"], params["bd2"])

    packed = packed[:B]
    recon = packed[:, :Dp]
    mu = packed[:, Dp:Dp + Dz]
    logvar = packed[:, Dp + Dz:]
    return recon, mu, logvar


def init_params(key, pos_dim, mom_dim, hidden, latent):
    ks = jax.random.split(key, 8)
    s = 0.1

    def w(k, shape):
        return (s * jax.random.normal(k, shape)).astype(jnp.float32)

    wmu = w(ks[2], (hidden, latent))
    wlv = w(ks[3], (hidden, latent))
    return {
        # encoder first layer: fused weight for the [pos, mom] concat
        "we":  jnp.concatenate([w(ks[0], (pos_dim, hidden)),
                                w(ks[1], (mom_dim, hidden))], axis=0),
        "be":  jnp.zeros((1, hidden), jnp.float32),
        # fused mu/logvar head: (hidden, 2*latent)
        "wh":  jnp.concatenate([wmu, wlv], axis=1),
        "bh":  jnp.zeros((1, 2 * latent), jnp.float32),
        # decoder first layer (split across the in-kernel [z, mom] concat)
        "wd_z": w(ks[4], (latent, hidden)),
        "wd_m": w(ks[5], (mom_dim, hidden)),
        "bd1":  jnp.zeros((1, hidden), jnp.float32),
        # decoder output layer
        "wd2":  w(ks[6], (hidden, pos_dim)),
        "bd2":  jnp.zeros((1, pos_dim), jnp.float32),
    }


def reference_forward(position, momenta, eps, p):
    # pure-JAX reference for correctness check
    latent = eps.shape[1]
    x = jnp.concatenate([position, momenta], axis=-1)
    h = jnp.maximum(x @ p["we"] + p["be"], 0.0)
    heads = h @ p["wh"] + p["bh"]
    mu, logvar = heads[:, :latent], heads[:, latent:]
    z = mu + eps * jnp.exp(0.5 * logvar)
    d_in = jnp.concatenate([z, momenta], axis=-1)
    wd1 = jnp.concatenate([p["wd_z"], p["wd_m"]], axis=0)
    hd = jnp.maximum(d_in @ wd1 + p["bd1"], 0.0)
    recon = hd @ p["wd2"] + p["bd2"]
    return recon, mu, logvar


if __name__ == "__main__":
    B, POS_DIM, MOM_DIM, HIDDEN, LATENT = 8, 16, 16, 32, 8

    key = jax.random.PRNGKey(0)
    k_pos, k_mom, k_eps, k_par = jax.random.split(key, 4)

    position = jax.random.normal(k_pos, (B, POS_DIM), dtype=jnp.float32)
    momenta = jax.random.normal(k_mom, (B, MOM_DIM), dtype=jnp.float32)
    # eps plays the role of torch.randn_like(std) in reparameterize().
    eps = jax.random.normal(k_eps, (B, LATENT), dtype=jnp.float32)

    params = init_params(k_par, POS_DIM, MOM_DIM, HIDDEN, LATENT)

    recon, mu, logvar = jax.block_until_ready(
        cvae_forward(position, momenta, eps, params))

    # correctness check against pure-JAX reference
    r_ref, mu_ref, lv_ref = reference_forward(position, momenta, eps, params)
    assert recon.shape == (B, POS_DIM)
    assert mu.shape == (B, LATENT) and logvar.shape == (B, LATENT)
    assert jnp.allclose(recon, r_ref, atol=1e-5)
    assert jnp.allclose(mu, mu_ref, atol=1e-5)
    assert jnp.allclose(logvar, lv_ref, atol=1e-5)

    print("KERNEL_OK")
</pallas_src>

<mosaic_0001>
module attributes {stable_mosaic.version = 11 : i64} {
  func.func @cvae_kernel(%arg0: i32, %arg1: memref<8x32xf32, #tpu.memory_space<vmem>>, %arg2: memref<8x16xf32, #tpu.memory_space<vmem>>, %arg3: memref<8x8xf32, #tpu.memory_space<vmem>>, %arg4: memref<32x32xf32, #tpu.memory_space<vmem>>, %arg5: memref<1x32xf32, #tpu.memory_space<vmem>>, %arg6: memref<32x16xf32, #tpu.memory_space<vmem>>, %arg7: memref<1x16xf32, #tpu.memory_space<vmem>>, %arg8: memref<8x32xf32, #tpu.memory_space<vmem>>, %arg9: memref<16x32xf32, #tpu.memory_space<vmem>>, %arg10: memref<1x32xf32, #tpu.memory_space<vmem>>, %arg11: memref<32x16xf32, #tpu.memory_space<vmem>>, %arg12: memref<1x16xf32, #tpu.memory_space<vmem>>, %arg13: memref<8x32xf32, #tpu.memory_space<vmem>>) attributes {dimension_semantics = [#tpu.dimension_semantics<parallel>], iteration_bounds = array<i64: 1>, scalar_prefetch = 0 : i64, scratch_operands = 0 : i64, tpu.core_type = #tpu.core_type<tc>, window_params = [{transform_indices = @transform_0, window_bounds = array<i64: 8, 32>}, {transform_indices = @transform_1, window_bounds = array<i64: 8, 16>}, {transform_indices = @transform_2, window_bounds = array<i64: 8, 8>}, {pipeline_mode = #tpu.pipeline_mode<synchronous>, transform_indices = @transform_3, window_bounds = array<i64: 32, 32>}, {pipeline_mode = #tpu.pipeline_mode<synchronous>, transform_indices = @transform_4, window_bounds = array<i64: 1, 32>}, {pipeline_mode = #tpu.pipeline_mode<synchronous>, transform_indices = @transform_5, window_bounds = array<i64: 32, 16>}, {pipeline_mode = #tpu.pipeline_mode<synchronous>, transform_indices = @transform_6, window_bounds = array<i64: 1, 16>}, {pipeline_mode = #tpu.pipeline_mode<synchronous>, transform_indices = @transform_7, window_bounds = array<i64: 8, 32>}, {pipeline_mode = #tpu.pipeline_mode<synchronous>, transform_indices = @transform_8, window_bounds = array<i64: 16, 32>}, {pipeline_mode = #tpu.pipeline_mode<synchronous>, transform_indices = @transform_9, window_bounds = array<i64: 1, 32>}, {pipeline_mode = #tpu.pipeline_mode<synchronous>, transform_indices = @transform_10, window_bounds = array<i64: 32, 16>}, {pipeline_mode = #tpu.pipeline_mode<synchronous>, transform_indices = @transform_11, window_bounds = array<i64: 1, 16>}, {transform_indices = @transform_12, window_bounds = array<i64: 8, 32>}]} {
    %c0 = arith.constant 0 : index
    %c0_0 = arith.constant 0 : index
    %0 = vector.load %arg1[%c0, %c0_0] : memref<8x32xf32, #tpu.memory_space<vmem>>, vector<8x32xf32>
    %c0_1 = arith.constant 0 : index
    %c0_2 = arith.constant 0 : index
    %1 = vector.load %arg2[%c0_1, %c0_2] : memref<8x16xf32, #tpu.memory_space<vmem>>, vector<8x16xf32>
    %c0_3 = arith.constant 0 : index
    %c0_4 = arith.constant 0 : index
    %2 = vector.load %arg3[%c0_3, %c0_4] : memref<8x8xf32, #tpu.memory_space<vmem>>, vector<8x8xf32>
    %c0_5 = arith.constant 0 : index
    %c0_6 = arith.constant 0 : index
    %3 = vector.load %arg4[%c0_5, %c0_6] : memref<32x32xf32, #tpu.memory_space<vmem>>, vector<32x32xf32>
    %cst = arith.constant dense<0.000000e+00> : vector<8x32xf32>
    %4 = tpu.matmul %0, %3, %cst {dimension_numbers = #tpu.dot_dimension_numbers<[1], [0], [0], [1], [0, 0, 1, 1], [], []>} : vector<8x32xf32>, vector<32x32xf32>, vector<8x32xf32> -> vector<8x32xf32>
    %c0_7 = arith.constant 0 : index
    %c0_8 = arith.constant 0 : index
    %5 = vector.load %arg5[%c0_7, %c0_8] : memref<1x32xf32, #tpu.memory_space<vmem>>, vector<1x32xf32>
    %6 = vector.broadcast %5 : vector<1x32xf32> to vector<8x32xf32>
    %7 = arith.addf %4, %6 : vector<8x32xf32>
    %cst_9 = arith.constant 0.000000e+00 : f32
    %8 = vector.broadcast %cst_9 : f32 to vector<8x32xf32>
    %9 = arith.maximumf %7, %8 : vector<8x32xf32>
    %c0_10 = arith.constant 0 : index
    %c0_11 = arith.constant 0 : index
    %10 = vector.load %arg6[%c0_10, %c0_11] : memref<32x16xf32, #tpu.memory_space<vmem>>, vector<32x16xf32>
    %cst_12 = arith.constant dense<0.000000e+00> : vector<8x16xf32>
    %11 = tpu.matmul %9, %10, %cst_12 {dimension_numbers = #tpu.dot_dimension_numbers<[1], [0], [0], [1], [0, 0, 1, 1], [], []>} : vector<8x32xf32>, vector<32x16xf32>, vector<8x16xf32> -> vector<8x16xf32>
    %c0_13 = arith.constant 0 : index
    %c0_14 = arith.constant 0 : index
    %12 = vector.load %arg7[%c0_13, %c0_14] : memref<1x16xf32, #tpu.memory_space<vmem>>, vector<1x16xf32>
    %13 = vector.broadcast %12 : vector<1x16xf32> to vector<8x16xf32>
    %14 = arith.addf %11, %13 : vector<8x16xf32>
    %15 = vector.extract_strided_slice %14 {offsets = [0, 0], sizes = [8, 8], strides = [1, 1]} : vector<8x16xf32> to vector<8x8xf32>
    %16 = vector.extract_strided_slice %14 {offsets = [0, 8], sizes = [8, 8], strides = [1, 1]} : vector<8x16xf32> to vector<8x8xf32>
    %cst_15 = arith.constant 5.000000e-01 : f32
    %17 = vector.broadcast %cst_15 : f32 to vector<8x8xf32>
    %18 = arith.mulf %17, %16 : vector<8x8xf32>
    %19 = math.exp %18 : vector<8x8xf32>
    %20 = arith.mulf %2, %19 : vector<8x8xf32>
    %21 = arith.addf %15, %20 : vector<8x8xf32>
    %c0_16 = arith.constant 0 : index
    %c0_17 = arith.constant 0 : index
    %22 = vector.load %arg8[%c0_16, %c0_17] : memref<8x32xf32, #tpu.memory_space<vmem>>, vector<8x32xf32>
    %cst_18 = arith.constant dense<0.000000e+00> : vector<8x32xf32>
    %23 = tpu.matmul %21, %22, %cst_18 {dimension_numbers = #tpu.dot_dimension_numbers<[1], [0], [0], [1], [0, 0, 1, 1], [], []>} : vector<8x8xf32>, vector<8x32xf32>, vector<8x32xf32> -> vector<8x32xf32>
    %c0_19 = arith.constant 0 : index
    %c0_20 = arith.constant 0 : index
    %24 = vector.load %arg9[%c0_19, %c0_20] : memref<16x32xf32, #tpu.memory_space<vmem>>, vector<16x32xf32>
    %cst_21 = arith.constant dense<0.000000e+00> : vector<8x32xf32>
    %25 = tpu.matmul %1, %24, %cst_21 {dimension_numbers = #tpu.dot_dimension_numbers<[1], [0], [0], [1], [0, 0, 1, 1], [], []>} : vector<8x16xf32>, vector<16x32xf32>, vector<8x32xf32> -> vector<8x32xf32>
    %26 = arith.addf %23, %25 : vector<8x32xf32>
    %c0_22 = arith.constant 0 : index
    %c0_23 = arith.constant 0 : index
    %27 = vector.load %arg10[%c0_22, %c0_23] : memref<1x32xf32, #tpu.memory_space<vmem>>, vector<1x32xf32>
    %28 = vector.broadcast %27 : vector<1x32xf32> to vector<8x32xf32>
    %29 = arith.addf %26, %28 : vector<8x32xf32>
    %cst_24 = arith.constant 0.000000e+00 : f32
    %30 = vector.broadcast %cst_24 : f32 to vector<8x32xf32>
    %31 = arith.maximumf %29, %30 : vector<8x32xf32>
    %c0_25 = arith.constant 0 : index
    %c0_26 = arith.constant 0 : index
    %32 = vector.load %arg11[%c0_25, %c0_26] : memref<32x16xf32, #tpu.memory_space<vmem>>, vector<32x16xf32>
    %cst_27 = arith.constant dense<0.000000e+00> : vector<8x16xf32>
    %33 = tpu.matmul %31, %32, %cst_27 {dimension_numbers = #tpu.dot_dimension_numbers<[1], [0], [0], [1], [0, 0, 1, 1], [], []>} : vector<8x32xf32>, vector<32x16xf32>, vector<8x16xf32> -> vector<8x16xf32>
    %c0_28 = arith.constant 0 : index
    %c0_29 = arith.constant 0 : index
    %34 = vector.load %arg12[%c0_28, %c0_29] : memref<1x16xf32, #tpu.memory_space<vmem>>, vector<1x16xf32>
    %35 = vector.broadcast %34 : vector<1x16xf32> to vector<8x16xf32>
    %36 = arith.addf %33, %35 : vector<8x16xf32>
    %37 = tpu.concatenate %36, %14 in 1 : vector<8x16xf32>, vector<8x16xf32> -> vector<8x32xf32>
    %c0_30 = arith.constant 0 : index
    %c0_31 = arith.constant 0 : index
    %38 = vector.load %arg13[%c0_30, %c0_31] : memref<8x32xf32, #tpu.memory_space<vmem>>, vector<8x32xf32>
    tpu.vector_store %arg13[%c0_30, %c0_31], %37 {strides = array<i32>} : memref<8x32xf32, #tpu.memory_space<vmem>>, vector<8x32xf32>,
    return
  }
  func.func @transform_0(%arg0: i32) -> (i32, i32) {
    %c0_i32 = arith.constant 0 : i32
    %c0_i32_0 = arith.constant 0 : i32
    return %arg0, %c0_i32 : i32, i32
  }
  func.func @transform_1(%arg0: i32) -> (i32, i32) {
    %c0_i32 = arith.constant 0 : i32
    %c0_i32_0 = arith.constant 0 : i32
    return %arg0, %c0_i32 : i32, i32
  }
  func.func @transform_2(%arg0: i32) -> (i32, i32) {
    %c0_i32 = arith.constant 0 : i32
    %c0_i32_0 = arith.constant 0 : i32
    return %arg0, %c0_i32 : i32, i32
  }
  func.func @transform_3(%arg0: i32) -> (i32, i32) {
    %c0_i32 = arith.constant 0 : i32
    %c0_i32_0 = arith.constant 0 : i32
    %c0_i32_1 = arith.constant 0 : i32
    return %c0_i32, %c0_i32_0 : i32, i32
  }
  func.func @transform_4(%arg0: i32) -> (i32, i32) {
    %c0_i32 = arith.constant 0 : i32
    %c0_i32_0 = arith.constant 0 : i32
    %c0_i32_1 = arith.constant 0 : i32
    return %c0_i32, %c0_i32_0 : i32, i32
  }
  func.func @transform_5(%arg0: i32) -> (i32, i32) {
    %c0_i32 = arith.constant 0 : i32
    %c0_i32_0 = arith.constant 0 : i32
    %c0_i32_1 = arith.constant 0 : i32
    return %c0_i32, %c0_i32_0 : i32, i32
  }
  func.func @transform_6(%arg0: i32) -> (i32, i32) {
    %c0_i32 = arith.constant 0 : i32
    %c0_i32_0 = arith.constant 0 : i32
    %c0_i32_1 = arith.constant 0 : i32
    return %c0_i32, %c0_i32_0 : i32, i32
  }
  func.func @transform_7(%arg0: i32) -> (i32, i32) {
    %c0_i32 = arith.constant 0 : i32
    %c0_i32_0 = arith.constant 0 : i32
    %c0_i32_1 = arith.constant 0 : i32
    return %c0_i32, %c0_i32_0 : i32, i32
  }
  func.func @transform_8(%arg0: i32) -> (i32, i32) {
    %c0_i32 = arith.constant 0 : i32
    %c0_i32_0 = arith.constant 0 : i32
    %c0_i32_1 = arith.constant 0 : i32
    return %c0_i32, %c0_i32_0 : i32, i32
  }
  func.func @transform_9(%arg0: i32) -> (i32, i32) {
    %c0_i32 = arith.constant 0 : i32
    %c0_i32_0 = arith.constant 0 : i32
    %c0_i32_1 = arith.constant 0 : i32
    return %c0_i32, %c0_i32_0 : i32, i32
  }
  func.func @transform_10(%arg0: i32) -> (i32, i32) {
    %c0_i32 = arith.constant 0 : i32
    %c0_i32_0 = arith.constant 0 : i32
    %c0_i32_1 = arith.constant 0 : i32
    return %c0_i32, %c0_i32_0 : i32, i32
  }
  func.func @transform_11(%arg0: i32) -> (i32, i32) {
    %c0_i32 = arith.constant 0 : i32
    %c0_i32_0 = arith.constant 0 : i32
    %c0_i32_1 = arith.constant 0 : i32
    return %c0_i32, %c0_i32_0 : i32, i32
  }
  func.func @transform_12(%arg0: i32) -> (i32, i32) {
    %c0_i32 = arith.constant 0 : i32
    %c0_i32_0 = arith.constant 0 : i32
    return %arg0, %c0_i32 : i32, i32
  }
}

</mosaic_0001>

<bundles_post_ra>
// kernel: cvae_forward.1
= control target key start
LH: loop header
LB: loop body
LE: loop exit
PB: predicated region body
PF: predicated region fallthrough
CT: control target
= control target key end

     0   :  { %vm52_vm0 = vcmask 261120   ;;  %s229_s23 = smov 16   ;;  %vm120_vm1 = vcmask 130048   ;;  %vm144_vm2 = vcmask 64512   ;;  %s370_s3 = inlined_call_operand.vmem [shape: f32[32,32], index: 3, kind: input, shape index: {}]   ;;  %s371_s5 = inlined_call_operand.vmem [shape: f32[32,16], index: 5, kind: input, shape index: {}]   ;;  %s372_s4 = inlined_call_operand.vmem [shape: f32[1,32], index: 4, kind: input, shape index: {}]   ;;  %s373_s0 = inlined_call_operand.vmem [shape: f32[8,32], index: 0, kind: input, shape index: {}]   ;;  %s374_s6 = inlined_call_operand.vmem [shape: f32[1,16], index: 6, kind: input, shape index: {}]   ;;  %s375_s8 = inlined_call_operand.vmem [shape: f32[16,32], index: 8, kind: input, shape index: {}]   ;;  %s376_s7 = inlined_call_operand.vmem [shape: f32[8,32], index: 7, kind: input, shape index: {}]   ;;  %s377_s1 = inlined_call_operand.vmem [shape: f32[8,16], index: 1, kind: input, shape index: {}]   ;;  %s378_s10 = inlined_call_operand.vmem [shape: f32[32,16], index: 10, kind: input, shape index: {}]   ;;  %s379_s9 = inlined_call_operand.vmem [shape: f32[1,32], index: 9, kind: input, shape index: {}]   ;;  %s380_s2 = inlined_call_operand.vmem [shape: f32[8,8], index: 2, kind: input, shape index: {}]   ;;  %s381_s11 = inlined_call_operand.vmem [shape: f32[1,16], index: 11, kind: input, shape index: {}]   ;;  %s382_s12 = inlined_call_operand.vmem [shape: f32[8,32], index: 12, kind: output, shape index: {}]  }
   0x1   :  { %v47_v0 = vld [vmem:[%s370_s3 + $0x18] sm:$0xff]  ;;  %v46_v1 = vld [vmem:[%s370_s3 + $0x10] sm:$0xff]  ;;  %v45_v3 = vld [vmem:[%s370_s3 + $0x8] sm:$0xff] }
   0x2   :  { %68 = vmatpush.msra.mxu0 %v47_v0  ;;  %v80_v2 = vld [vmem:[%s371_s5 + $0x18] sm:$0xff]  ;;  %v44_v4 = vld [vmem:[%s370_s3] sm:$0xff]  ;;  %v79_v6 = vld [vmem:[%s371_s5 + $0x10] sm:$0xff] }
   0x3   :  { %100 = vmatpush.msra.mxu1 %v80_v2  ;;  %v41_v5 = vld [vmem:[%s373_s0] sm:$0xff]  ;;  %v78_v7 = vld [vmem:[%s371_s5 + $0x8] sm:$0xff]  ;;  %v177_v23 = vld [vmem:[%s378_s10 + $0x18] sm:$0xff] }
   0x4   :  { %69 = vmatpush.msra.mxu0 %v46_v1  ;;  %v77_v8 = vld [vmem:[%s371_s5] sm:$0xff]  ;;  %s228_s5 = smov 120   ;;  %v119_v19 = vld [vmem:[%s375_s8 + $0x8] sm:$0xff]  ;;  %v176_v28 = vld [vmem:[%s378_s10 + $0x10] sm:$0xff] }
   0x5   :  { %101 = vmatpush.msra.mxu1 %v79_v6  ;;  %v222_v9 = vld [vmem:[%s372_s4] ss:$0 sm:$0xff]  ;;  %138 = vmatpush.msra.mxu2 %v119_v19  ;;  %v175_v29 = vld [vmem:[%s378_s10 + $0x8] sm:$0xff] }
   0x6   :  { %70 = vmatpush.msra.mxu0 %v45_v3  ;;  %v223_v13 = vld [vmem:[%s374_s6] ss:$0 sm:$0xff] }
   0x7   :  { %102 = vmatpush.msra.mxu1 %v78_v7  ;;  %v118_v20 = vld [vmem:[%s375_s8] sm:$0xff] }
   0x8   :  { %71 = vmatpush.msra.mxu0 %v44_v4  ;;  %v117_v21 = vld [vmem:[%s376_s7] sm:$0xff]  ;;  %139 = vmatpush.msra.mxu2 %v118_v20 }
   0x9   :  { %215 = vmatmul.msk.f32.vlgmr.msra.gmra.mxu0 %vm52_vm0, %v41_v5  ;;  %103 = vmatpush.msra.mxu1 %v77_v8  ;;  %v42_v22 = vld [vmem:[%s377_s1] sm:$0xff] }
   0xa   :  { %163 = vmatpush.msra.mxu3 %v117_v21  ;;  %217 = vmatmul.msk.f32.vlgmr.msra.gmra.mxu2 %vm120_vm1, %v42_v22  ;;  %v43_v24 = vld [vmem:[%s380_s2] sm:$0xff] }
   0xb   :  { %v174_v30 = vld [vmem:[%s378_s10] sm:$0xff] }
   0xc   :  { %197 = vmatpush.msrb.mxu3 %v177_v23  ;;  %v224_v32 = vld [vmem:[%s379_s9] ss:$0 sm:$0xff] }
   0xd   :  { %v225_v37 = vld [vmem:[%s381_s11] ss:$0 sm:$0xff] }
   0xe   :  { %198 = vmatpush.msrb.mxu3 %v176_v28 }
  0x10   :  { %199 = vmatpush.msrb.mxu3 %v175_v29 }
  0x12   :  { %200 = vmatpush.msrb.mxu3 %v174_v30 }
  0x86   :  { %v73_v10 = vpop.f32.mrf.mxu0 }
  0x87   :  { %v74_v11 = vadd.f32 %v222_v9, %v73_v10 }
  0x89   :  { %v76_v12 = vmax.f32 %v74_v11, 0.0 }
  0x8b   :  { %216 = vmatmul.msk.f32.vlgmr.msra.gmra.mxu1 %vm52_vm0, %v76_v12 }
  0x8d   :  { %v141_v31 = vpop.f32.mrf.mxu2 }
 0x108   :  { %v105_v14 = vpop.f32.mrf.mxu1 }
 0x109   :  { %v106_v15 = vadd.f32 %v223_v13, %v105_v14 }
 0x10b   :  { %v108_v16 = vmul.f32 0.5, %v106_v15 }
 0x10d   :  { %v109_v17 = vmul.f32 1.442695, %v108_v16 }
 0x10f   :  { %226 = vpow2.f32 %v109_v17 }
 0x115   :  { %v227_v18 = vpop.eup %226 }
 0x116   :  { %112 = vrot.lane.b32.xlu0 %v227_v18, %s228_s5 }
 0x11e   :  { %206 = vrot.lane.b32.xlu0 %v106_v15, %s229_s23 }
 0x188   :  { %v113_v25 = vpop.permute.xlu0 %112 }
 0x189   :  { %v115_v26 = vmul.f32 %v113_v25, %v43_v24 }
 0x18b   :  { %v116_v27 = vadd.f32 %v115_v26, %v106_v15 }
 0x18d   :  { %218 = vmatmul.msk.f32.vlgmr.msra.gmra.mxu3 %vm144_vm2, %v116_v27 }
 0x190   :  { %v207_v40 = vpop.permute.xlu0 %206 }
 0x210   :  { %v165_v33 = vpop.f32.mrf.mxu3 }
 0x211   :  { %v166_v34 = vadd.f32 %v165_v33, %v141_v31 }
 0x213   :  { %v172_v35 = vadd.f32 %v224_v32, %v166_v34 }
 0x215   :  { %v173_v36 = vmax.f32 %v172_v35, 0.0 }
 0x217   :  { %219 = vmatmul.msk.f32.vlgmr.msrb.gmra.mxu3 %vm52_vm0, %v173_v36 }
 0x29a   :  { %v202_v38 = vpop.f32.mrf.mxu3 }
 0x29b   :  { %v203_v39 = vadd.f32 %v225_v37, %v202_v38 }
 0x29d   :  { %v209_v41 = vsel %vm120_vm1, %v203_v39, %v207_v40 }
 0x29e   :  { %210 = vst.msk [vmem:[%s382_s12] sm:$0xff] %vm52_vm0, %v209_v41 }

</bundles_post_ra>
